<compile_context>
chip_gen: v7x
topology: tpu7x:2x2x1
jax: 0.10.0
libtpu: 0.0.40
codegen_flags: <defaults>
</compile_context>

<pallas_src>
import jax
import jax.numpy as jnp
from jax.experimental import pallas as pl
from jax.experimental.pallas import tpu as pltpu


def _add_one_kernel(x_ref, o_ref):
    # One vld + one vadd + one vst per vreg; no temporaries, no casts.
    o_ref[...] = x_ref[...] + jnp.asarray(1, dtype=o_ref.dtype)


def _round_up(a: int, b: int) -> int:
    return -(-a // b) * b


def _pick_tile_bytes():
    """Generation-aware (tile_bytes, vmem_limit_bytes_or_None)."""
    try:
        kind = jax.devices()[0].device_kind.lower()
    except Exception:
        kind = ""
    if "v7" in kind or "7x" in kind:
        # v7x: ~3.2 TB/s HBM per TC, 64 MiB physical VMEM -> larger tiles,
        # scoped VMEM raised to 48 MiB (4 x 7 MiB resident buffers = 28 MiB).
        return 7 << 20, 48 << 20
    if "v6" in kind:
        # v6e: 4 x 5 MiB = 20 MiB fits the 32 MiB default scoped VMEM.
        return 5 << 20, None
    # v5e (16 MiB default scoped VMEM) and anything unknown: stay conservative;
    # 4 x 2 MiB = 8 MiB and per-step overhead is already <~7% at 0.82 TB/s.
    return 2 << 20, None


def my_first_nn_forward(x: jax.Array, *, min_pallas_elems: int = 1 << 18) -> jax.Array:
    """Equivalent of MyFirstNN.forward(input) = input + 1.

    Inputs smaller than `min_pallas_elems`, or whose element count is not a
    multiple of 128 (lane-ragged), use plain XLA `x + 1`: for a mem-bound
    elementwise add XLA already hits the 2-pass HBM roofline and stays fusable
    with surrounding ops, while padding/slicing around a custom call would only
    add whole-array HBM traffic.
    """
    orig_shape = x.shape
    dtype = x.dtype
    n = x.size
    one = jnp.asarray(1, dtype=dtype)

    if n == 0 or n < min_pallas_elems:
        return x + one

    # Largest lane-dense width (multiple of 128) dividing n exactly, so the 2-D
    # view is a pure reshape (no pad on input, no slice on output).
    c = 0
    for cand in (1024, 512, 256, 128):
        if n % cand == 0:
            c = cand
            break
    if c == 0:
        # Lane-ragged element count: XLA's fused elementwise add is optimal.
        return x + one

    itemsize = jnp.dtype(dtype).itemsize
    # Sublane alignment for the second-minor dim: f32 -> 8, bf16 -> 16, i8 -> 32.
    row_align = max(8, 32 // itemsize)
    rows = n // c

    tile_bytes, vmem_limit = _pick_tile_bytes()
    tile_rows = max(row_align,
                    (tile_bytes // (c * itemsize)) // row_align * row_align)

    # Keep >=4 grid steps on large arrays: v7x's two TensorCores each get >=2
    # tiles and double-buffering always has a next tile to prefetch.
    if rows * c * itemsize >= (8 << 20) and pl.cdiv(rows, tile_rows) < 4:
        tile_rows = max(row_align, _round_up(-(-rows // 4), row_align))

    if tile_rows >= rows:
        tile_rows = rows  # single full block (block_shape == array dims is legal)

    grid = (pl.cdiv(rows, tile_rows),)

    compiler_kwargs = dict(dimension_semantics=("parallel",))
    if vmem_limit is not None:
        compiler_kwargs["vmem_limit_bytes"] = vmem_limit

    out2d = pl.pallas_call(
        _add_one_kernel,
        out_shape=jax.ShapeDtypeStruct((rows, c), dtype),
        grid=grid,
        in_specs=[pl.BlockSpec((tile_rows, c), lambda i: (i, 0))],
        out_specs=pl.BlockSpec((tile_rows, c), lambda i: (i, 0)),
        compiler_params=pltpu.CompilerParams(**compiler_kwargs),
        cost_estimate=pl.CostEstimate(
            flops=n, transcendentals=0, bytes_accessed=2 * n * itemsize),
    )(x.reshape(rows, c))

    return out2d.reshape(orig_shape)


if __name__ == "__main__":
    key = jax.random.PRNGKey(0)

    # Small NCHW input consistent with a generic nn.Module forward; force the
    # Pallas path (2048 elems is a multiple of 1024 -> single (2, 1024) block).
    x = jax.random.normal(key, (2, 4, 16, 16), dtype=jnp.float32)
    fwd_forced = jax.jit(lambda t: my_first_nn_forward(t, min_pallas_elems=0))
    out = fwd_forced(x)
    jax.block_until_ready(out)
    assert out.shape == x.shape and out.dtype == x.dtype
    assert jnp.allclose(out, x + 1.0)

    # Larger aligned input exercises the default-threshold Pallas path.
    xl = jax.random.normal(key, (8, 8, 128, 128), dtype=jnp.float32)
    out_l = jax.jit(my_first_nn_forward)(xl)
    jax.block_until_ready(out_l)
    assert jnp.allclose(out_l, xl + 1.0)

    # Lane-ragged element count (3*5*7 = 105) -> XLA fallback path.
    y = jax.random.normal(key, (3, 5, 7), dtype=jnp.float32)
    out_y = jax.jit(my_first_nn_forward)(y)
    jax.block_until_ready(out_y)
    assert jnp.allclose(out_y, y + 1.0)

    print("KERNEL_OK")
</pallas_src>

<mosaic_0001>
module attributes {stable_mosaic.version = 11 : i64} {
  func.func @_add_one_kernel(%arg0: i32, %arg1: memref<2x1024xf32, #tpu.memory_space<vmem>>, %arg2: memref<2x1024xf32, #tpu.memory_space<vmem>>) attributes {dimension_semantics = [#tpu.dimension_semantics<parallel>], iteration_bounds = array<i64: 1>, scalar_prefetch = 0 : i64, scratch_operands = 0 : i64, tpu.core_type = #tpu.core_type<tc>, window_params = [{transform_indices = @transform_0, window_bounds = array<i64: 2, 1024>}, {transform_indices = @transform_1, window_bounds = array<i64: 2, 1024>}]} {
    %c0 = arith.constant 0 : index
    %c0_0 = arith.constant 0 : index
    %0 = vector.load %arg1[%c0, %c0_0] : memref<2x1024xf32, #tpu.memory_space<vmem>>, vector<2x1024xf32>
    %cst = arith.constant 1.000000e+00 : f32
    %1 = vector.broadcast %cst : f32 to vector<2x1024xf32>
    %2 = arith.addf %0, %1 : vector<2x1024xf32>
    %c0_1 = arith.constant 0 : index
    %c0_2 = arith.constant 0 : index
    %3 = vector.load %arg2[%c0_1, %c0_2] : memref<2x1024xf32, #tpu.memory_space<vmem>>, vector<2x1024xf32>
    tpu.vector_store %arg2[%c0_1, %c0_2], %2 {strides = array<i32>} : memref<2x1024xf32, #tpu.memory_space<vmem>>, vector<2x1024xf32>,
    return
  }
  func.func @transform_0(%arg0: i32) -> (i32, i32) {
    %c0_i32 = arith.constant 0 : i32
    %c0_i32_0 = arith.constant 0 : i32
    return %arg0, %c0_i32 : i32, i32
  }
  func.func @transform_1(%arg0: i32) -> (i32, i32) {
    %c0_i32 = arith.constant 0 : i32
    %c0_i32_0 = arith.constant 0 : i32
    return %arg0, %c0_i32 : i32, i32
  }
}

</mosaic_0001>

<bundles_post_ra>
// kernel: _lambda_.1
= control target key start
LH: loop header
LB: loop body
LE: loop exit
PB: predicated region body
PF: predicated region fallthrough
CT: control target
= control target key end

     0   :  { %s40_s0 = inlined_call_operand.vmem [shape: f32[2,1024], index: 0, kind: input, shape index: {}]   ;;  %s41_s1 = inlined_call_operand.vmem [shape: f32[2,1024], index: 1, kind: output, shape index: {}]  }
   0x1   :  { %v8_v0 = vld [vmem:[%s40_s0] sm:$0xff]  ;;  %v9_v1 = vld [vmem:[%s40_s0 + $0x8] sm:$0xff] }
   0x2   :  { %v10_v2 = vadd.f32 1.0, %v8_v0  ;;  %v11_v3 = vadd.f32 1.0, %v9_v1 }
   0x4   :  { %12 = vst [vmem:[%s41_s1] sm:$0xff] %v10_v2  ;;  %13 = vst [vmem:[%s41_s1 + $0x8] sm:$0xff] %v11_v3 }

</bundles_post_ra>
